<compile_context>
chip_gen: v5e
topology: v5e:2x2
jax: 0.10.0
libtpu: 0.0.40
codegen_flags: <defaults>
</compile_context>

<pallas_src>
import functools

import jax
import jax.numpy as jnp
from jax.experimental import pallas as pl
from jax.experimental.pallas import tpu as pltpu


def decoder_kernel(z_ref, w_h_ref, b_h_ref,
                   w_hh_ref, b_ih_ref, b_hh_ref,
                   w_out_ref, b_out_ref,
                   out_ref, hist_ref,
                   *, hidden_size, seq_len):
    B = z_ref.shape[0]
    H = hidden_size
    T = seq_len

    # fc_hidden: initial hidden state h0 = z @ W_h + b_h
    h = (jnp.dot(z_ref[...], w_h_ref[...], preferred_element_type=jnp.float32)
         + b_h_ref[...])                                           # (B, H)

    w_hh = w_hh_ref[...]                                           # (H, 3H)
    b_ih = b_ih_ref[...]                                           # (1, 3H)
    b_hh = b_hh_ref[...]                                           # (1, 3H)

    # GRU input is all zeros -> W_ih @ x == 0.  Pre-fold the r/z biases
    # (b_ir + b_hr, b_iz + b_hz) and pre-broadcast everything to (B, .)
    # once, OUTSIDE the serial recurrence.
    b_r = jnp.broadcast_to(b_ih[:, 0:H] + b_hh[:, 0:H], (B, H))
    b_z = jnp.broadcast_to(b_ih[:, H:2 * H] + b_hh[:, H:2 * H], (B, H))
    b_in = jnp.broadcast_to(b_ih[:, 2 * H:3 * H], (B, H))
    b_hn = jnp.broadcast_to(b_hh[:, 2 * H:3 * H], (B, H))

    # Fully-unrolled recurrence: one small MXU matmul per step is the only
    # op left on the serial dependency chain.
    for t in range(T):
        gh = jnp.dot(h, w_hh, preferred_element_type=jnp.float32)  # (B, 3H)
        r = jax.nn.sigmoid(gh[:, 0:H] + b_r)
        u = jax.nn.sigmoid(gh[:, H:2 * H] + b_z)
        n = jnp.tanh(b_in + r * (gh[:, 2 * H:3 * H] + b_hn))
        h = n + u * (h - n)                      # == (1 - u) * n + u * h
        hist_ref[pl.ds(t * B, B), :] = h

    # fc_output for the whole sequence in ONE fused matmul (hoisted out of
    # the recurrence): (T*B, H) @ (H, O) + b_out.
    out_ref[...] = (jnp.dot(hist_ref[...], w_out_ref[...],
                            preferred_element_type=jnp.float32)
                    + b_out_ref[...])


def decoder_forward(z, params, seq_len):
    B, _ = z.shape
    H = params["w_hh"].shape[0]
    O = params["w_out"].shape[1]
    T = int(seq_len)

    args = (z.astype(jnp.float32),
            params["w_h"], params["b_h"],
            params["w_hh"], params["b_ih"], params["b_hh"],
            params["w_out"], params["b_out"])

    kern = functools.partial(decoder_kernel, hidden_size=H, seq_len=T)
    vmem = pl.BlockSpec(memory_space=pltpu.MemorySpace.VMEM)
    out_flat = pl.pallas_call(
        kern,
        out_shape=jax.ShapeDtypeStruct((T * B, O), jnp.float32),
        in_specs=[vmem] * len(args),
        out_specs=vmem,
        scratch_shapes=[pltpu.VMEM((T * B, H), jnp.float32)],
    )(*args)

    # (T*B, O) -> (T, B, O) -> (B, T, O) to match batch_first=True output.
    return out_flat.reshape(T, B, O).transpose(1, 0, 2)


def init_params(key, latent_size, hidden_size, output_size):
    """Deterministic init mirroring the PyTorch module's parameter shapes
    (weights stored transposed: (in, out))."""
    L, H, O = latent_size, hidden_size, output_size
    k = 1.0 / jnp.sqrt(jnp.float32(H))
    keys = jax.random.split(key, 8)

    def u(kk, shape):
        return jax.random.uniform(kk, shape, jnp.float32, -k, k)

    return {
        # fc_hidden
        "w_h": u(keys[0], (L, H)),
        "b_h": u(keys[1], (1, H)),
        # single-layer unidirectional GRU (PyTorch gate order [r, z, n])
        "w_ih": u(keys[2], (H, 3 * H)),   # unused by the kernel: GRU input == 0
        "w_hh": u(keys[3], (H, 3 * H)),
        "b_ih": u(keys[4], (1, 3 * H)),
        "b_hh": u(keys[5], (1, 3 * H)),
        # fc_output
        "w_out": u(keys[6], (H, O)),
        "b_out": u(keys[7], (1, O)),
    }


def decoder_reference(z, params, seq_len):
    """Pure-JAX reference mirroring the PyTorch Decoder forward exactly
    (including the zero GRU inputs and the full W_ih path)."""
    B = z.shape[0]
    H = params["w_hh"].shape[0]

    h = z @ params["w_h"] + params["b_h"]                       # fc_hidden
    x = jnp.zeros((B, seq_len, H), jnp.float32)                 # zero inputs
    outs = []
    for t in range(seq_len):
        gi = x[:, t, :] @ params["w_ih"] + params["b_ih"]
        gh = h @ params["w_hh"] + params["b_hh"]
        r = jax.nn.sigmoid(gi[:, 0:H] + gh[:, 0:H])
        u = jax.nn.sigmoid(gi[:, H:2 * H] + gh[:, H:2 * H])
        n = jnp.tanh(gi[:, 2 * H:3 * H] + r * gh[:, 2 * H:3 * H])
        h = (1.0 - u) * n + u * h
        outs.append(h)
    outputs = jnp.stack(outs, axis=1)                           # (B, T, H)
    return outputs @ params["w_out"] + params["b_out"]          # (B, T, O)


if __name__ == "__main__":
    B, T = 2, 8            # batch, seq_len
    L, H, O = 16, 32, 4    # latent_size, hidden_size, output_size

    key = jax.random.PRNGKey(0)
    k_z, k_p = jax.random.split(key)
    z = jax.random.normal(k_z, (B, L), jnp.float32)
    params = init_params(k_p, L, H, O)

    out = decoder_forward(z, params, T)
    out = jax.block_until_ready(out)

    ref = decoder_reference(z, params, T)
    assert out.shape == (B, T, O)
    assert jnp.allclose(out, ref, atol=1e-5, rtol=1e-5)

    print("KERNEL_OK")
</pallas_src>

<mosaic_0001>
module attributes {stable_mosaic.version = 11 : i64} {
  func.func @decoder_kernel(%arg0: memref<2x16xf32, #tpu.memory_space<vmem>>, %arg1: memref<16x32xf32, #tpu.memory_space<vmem>>, %arg2: memref<1x32xf32, #tpu.memory_space<vmem>>, %arg3: memref<32x96xf32, #tpu.memory_space<vmem>>, %arg4: memref<1x96xf32, #tpu.memory_space<vmem>>, %arg5: memref<1x96xf32, #tpu.memory_space<vmem>>, %arg6: memref<32x4xf32, #tpu.memory_space<vmem>>, %arg7: memref<1x4xf32, #tpu.memory_space<vmem>>, %arg8: memref<16x4xf32, #tpu.memory_space<vmem>>, %arg9: memref<16x32xf32, #tpu.memory_space<vmem>>) attributes {dimension_semantics = [], scalar_prefetch = 0 : i64, scratch_operands = 1 : i64, tpu.core_type = #tpu.core_type<tc>} {
    %c0 = arith.constant 0 : index
    %c0_0 = arith.constant 0 : index
    %0 = vector.load %arg0[%c0, %c0_0] : memref<2x16xf32, #tpu.memory_space<vmem>>, vector<2x16xf32>
    %c0_1 = arith.constant 0 : index
    %c0_2 = arith.constant 0 : index
    %1 = vector.load %arg1[%c0_1, %c0_2] : memref<16x32xf32, #tpu.memory_space<vmem>>, vector<16x32xf32>
    %cst = arith.constant dense<0.000000e+00> : vector<2x32xf32>
    %2 = tpu.matmul %0, %1, %cst {dimension_numbers = #tpu.dot_dimension_numbers<[1], [0], [0], [1], [0, 0, 1, 1], [], []>} : vector<2x16xf32>, vector<16x32xf32>, vector<2x32xf32> -> vector<2x32xf32>
    %c0_3 = arith.constant 0 : index
    %c0_4 = arith.constant 0 : index
    %3 = vector.load %arg2[%c0_3, %c0_4] : memref<1x32xf32, #tpu.memory_space<vmem>>, vector<1x32xf32>
    %4 = vector.broadcast %3 : vector<1x32xf32> to vector<2x32xf32>
    %5 = arith.addf %2, %4 : vector<2x32xf32>
    %c0_5 = arith.constant 0 : index
    %c0_6 = arith.constant 0 : index
    %6 = vector.load %arg3[%c0_5, %c0_6] : memref<32x96xf32, #tpu.memory_space<vmem>>, vector<32x96xf32>
    %c0_7 = arith.constant 0 : index
    %c0_8 = arith.constant 0 : index
    %7 = vector.load %arg4[%c0_7, %c0_8] : memref<1x96xf32, #tpu.memory_space<vmem>>, vector<1x96xf32>
    %c0_9 = arith.constant 0 : index
    %c0_10 = arith.constant 0 : index
    %8 = vector.load %arg5[%c0_9, %c0_10] : memref<1x96xf32, #tpu.memory_space<vmem>>, vector<1x96xf32>
    %9 = vector.extract_strided_slice %7 {offsets = [0, 0], sizes = [1, 32], strides = [1, 1]} : vector<1x96xf32> to vector<1x32xf32>
    %10 = vector.extract_strided_slice %8 {offsets = [0, 0], sizes = [1, 32], strides = [1, 1]} : vector<1x96xf32> to vector<1x32xf32>
    %11 = arith.addf %9, %10 : vector<1x32xf32>
    %12 = vector.shape_cast %11 : vector<1x32xf32> to vector<1x32xf32>
    %13 = vector.broadcast %12 : vector<1x32xf32> to vector<2x32xf32>
    %14 = vector.extract_strided_slice %7 {offsets = [0, 32], sizes = [1, 32], strides = [1, 1]} : vector<1x96xf32> to vector<1x32xf32>
    %15 = vector.extract_strided_slice %8 {offsets = [0, 32], sizes = [1, 32], strides = [1, 1]} : vector<1x96xf32> to vector<1x32xf32>
    %16 = arith.addf %14, %15 : vector<1x32xf32>
    %17 = vector.shape_cast %16 : vector<1x32xf32> to vector<1x32xf32>
    %18 = vector.broadcast %17 : vector<1x32xf32> to vector<2x32xf32>
    %19 = vector.extract_strided_slice %7 {offsets = [0, 64], sizes = [1, 32], strides = [1, 1]} : vector<1x96xf32> to vector<1x32xf32>
    %20 = vector.shape_cast %19 : vector<1x32xf32> to vector<1x32xf32>
    %21 = vector.broadcast %20 : vector<1x32xf32> to vector<2x32xf32>
    %22 = vector.extract_strided_slice %8 {offsets = [0, 64], sizes = [1, 32], strides = [1, 1]} : vector<1x96xf32> to vector<1x32xf32>
    %23 = vector.shape_cast %22 : vector<1x32xf32> to vector<1x32xf32>
    %24 = vector.broadcast %23 : vector<1x32xf32> to vector<2x32xf32>
    %cst_11 = arith.constant dense<0.000000e+00> : vector<2x96xf32>
    %25 = tpu.matmul %5, %6, %cst_11 {dimension_numbers = #tpu.dot_dimension_numbers<[1], [0], [0], [1], [0, 0, 1, 1], [], []>} : vector<2x32xf32>, vector<32x96xf32>, vector<2x96xf32> -> vector<2x96xf32>
    %26 = vector.extract_strided_slice %25 {offsets = [0, 0], sizes = [2, 32], strides = [1, 1]} : vector<2x96xf32> to vector<2x32xf32>
    %27 = arith.addf %26, %13 : vector<2x32xf32>
    %28 = arith.negf %27 : vector<2x32xf32>
    %29 = math.exp %28 : vector<2x32xf32>
    %cst_12 = arith.constant 1.000000e+00 : f32
    %30 = vector.broadcast %cst_12 : f32 to vector<2x32xf32>
    %31 = arith.addf %30, %29 : vector<2x32xf32>
    %32 = arith.divf %30, %31 : vector<2x32xf32>
    %33 = vector.extract_strided_slice %25 {offsets = [0, 32], sizes = [2, 32], strides = [1, 1]} : vector<2x96xf32> to vector<2x32xf32>
    %34 = arith.addf %33, %18 : vector<2x32xf32>
    %35 = arith.negf %34 : vector<2x32xf32>
    %36 = math.exp %35 : vector<2x32xf32>
    %cst_13 = arith.constant 1.000000e+00 : f32
    %37 = vector.broadcast %cst_13 : f32 to vector<2x32xf32>
    %38 = arith.addf %37, %36 : vector<2x32xf32>
    %39 = arith.divf %37, %38 : vector<2x32xf32>
    %40 = vector.extract_strided_slice %25 {offsets = [0, 64], sizes = [2, 32], strides = [1, 1]} : vector<2x96xf32> to vector<2x32xf32>
    %41 = arith.addf %40, %24 : vector<2x32xf32>
    %42 = arith.mulf %32, %41 : vector<2x32xf32>
    %43 = arith.addf %21, %42 : vector<2x32xf32>
    %44 = math.tanh %43 : vector<2x32xf32>
    %45 = arith.subf %5, %44 : vector<2x32xf32>
    %46 = arith.mulf %39, %45 : vector<2x32xf32>
    %47 = arith.addf %44, %46 : vector<2x32xf32>
    %c0_14 = arith.constant 0 : index
    %c0_15 = arith.constant 0 : index
    %48 = vector.load %arg9[%c0_14, %c0_15] : memref<16x32xf32, #tpu.memory_space<vmem>>, vector<2x32xf32>
    tpu.vector_store %arg9[%c0_14, %c0_15], %47 {strides = array<i32>} : memref<16x32xf32, #tpu.memory_space<vmem>>, vector<2x32xf32>,
    %cst_16 = arith.constant dense<0.000000e+00> : vector<2x96xf32>
    %49 = tpu.matmul %47, %6, %cst_16 {dimension_numbers = #tpu.dot_dimension_numbers<[1], [0], [0], [1], [0, 0, 1, 1], [], []>} : vector<2x32xf32>, vector<32x96xf32>, vector<2x96xf32> -> vector<2x96xf32>
    %50 = vector.extract_strided_slice %49 {offsets = [0, 0], sizes = [2, 32], strides = [1, 1]} : vector<2x96xf32> to vector<2x32xf32>
    %51 = arith.addf %50, %13 : vector<2x32xf32>
    %52 = arith.negf %51 : vector<2x32xf32>
    %53 = math.exp %52 : vector<2x32xf32>
    %cst_17 = arith.constant 1.000000e+00 : f32
    %54 = vector.broadcast %cst_17 : f32 to vector<2x32xf32>
    %55 = arith.addf %54, %53 : vector<2x32xf32>
    %56 = arith.divf %54, %55 : vector<2x32xf32>
    %57 = vector.extract_strided_slice %49 {offsets = [0, 32], sizes = [2, 32], strides = [1, 1]} : vector<2x96xf32> to vector<2x32xf32>
    %58 = arith.addf %57, %18 : vector<2x32xf32>
    %59 = arith.negf %58 : vector<2x32xf32>
    %60 = math.exp %59 : vector<2x32xf32>
    %cst_18 = arith.constant 1.000000e+00 : f32
    %61 = vector.broadcast %cst_18 : f32 to vector<2x32xf32>
    %62 = arith.addf %61, %60 : vector<2x32xf32>
    %63 = arith.divf %61, %62 : vector<2x32xf32>
    %64 = vector.extract_strided_slice %49 {offsets = [0, 64], sizes = [2, 32], strides = [1, 1]} : vector<2x96xf32> to vector<2x32xf32>
    %65 = arith.addf %64, %24 : vector<2x32xf32>
    %66 = arith.mulf %56, %65 : vector<2x32xf32>
    %67 = arith.addf %21, %66 : vector<2x32xf32>
    %68 = math.tanh %67 : vector<2x32xf32>
    %69 = arith.subf %47, %68 : vector<2x32xf32>
    %70 = arith.mulf %63, %69 : vector<2x32xf32>
    %71 = arith.addf %68, %70 : vector<2x32xf32>
    %c2 = arith.constant 2 : index
    %c0_19 = arith.constant 0 : index
    %72 = vector.load %arg9[%c2, %c0_19] : memref<16x32xf32, #tpu.memory_space<vmem>>, vector<2x32xf32>
    tpu.vector_store %arg9[%c2, %c0_19], %71 {strides = array<i32>} : memref<16x32xf32, #tpu.memory_space<vmem>>, vector<2x32xf32>,
    %cst_20 = arith.constant dense<0.000000e+00> : vector<2x96xf32>
    %73 = tpu.matmul %71, %6, %cst_20 {dimension_numbers = #tpu.dot_dimension_numbers<[1], [0], [0], [1], [0, 0, 1, 1], [], []>} : vector<2x32xf32>, vector<32x96xf32>, vector<2x96xf32> -> vector<2x96xf32>
    %74 = vector.extract_strided_slice %73 {offsets = [0, 0], sizes = [2, 32], strides = [1, 1]} : vector<2x96xf32> to vector<2x32xf32>
    %75 = arith.addf %74, %13 : vector<2x32xf32>
    %76 = arith.negf %75 : vector<2x32xf32>
    %77 = math.exp %76 : vector<2x32xf32>
    %cst_21 = arith.constant 1.000000e+00 : f32
    %78 = vector.broadcast %cst_21 : f32 to vector<2x32xf32>
    %79 = arith.addf %78, %77 : vector<2x32xf32>
    %80 = arith.divf %78, %79 : vector<2x32xf32>
    %81 = vector.extract_strided_slice %73 {offsets = [0, 32], sizes = [2, 32], strides = [1, 1]} : vector<2x96xf32> to vector<2x32xf32>
    %82 = arith.addf %81, %18 : vector<2x32xf32>
    %83 = arith.negf %82 : vector<2x32xf32>
    %84 = math.exp %83 : vector<2x32xf32>
    %cst_22 = arith.constant 1.000000e+00 : f32
    %85 = vector.broadcast %cst_22 : f32 to vector<2x32xf32>
    %86 = arith.addf %85, %84 : vector<2x32xf32>
    %87 = arith.divf %85, %86 : vector<2x32xf32>
    %88 = vector.extract_strided_slice %73 {offsets = [0, 64], sizes = [2, 32], strides = [1, 1]} : vector<2x96xf32> to vector<2x32xf32>
    %89 = arith.addf %88, %24 : vector<2x32xf32>
    %90 = arith.mulf %80, %89 : vector<2x32xf32>
    %91 = arith.addf %21, %90 : vector<2x32xf32>
    %92 = math.tanh %91 : vector<2x32xf32>
    %93 = arith.subf %71, %92 : vector<2x32xf32>
    %94 = arith.mulf %87, %93 : vector<2x32xf32>
    %95 = arith.addf %92, %94 : vector<2x32xf32>
    %c4 = arith.constant 4 : index
    %c0_23 = arith.constant 0 : index
    %96 = vector.load %arg9[%c4, %c0_23] : memref<16x32xf32, #tpu.memory_space<vmem>>, vector<2x32xf32>
    tpu.vector_store %arg9[%c4, %c0_23], %95 {strides = array<i32>} : memref<16x32xf32, #tpu.memory_space<vmem>>, vector<2x32xf32>,
    %cst_24 = arith.constant dense<0.000000e+00> : vector<2x96xf32>
    %97 = tpu.matmul %95, %6, %cst_24 {dimension_numbers = #tpu.dot_dimension_numbers<[1], [0], [0], [1], [0, 0, 1, 1], [], []>} : vector<2x32xf32>, vector<32x96xf32>, vector<2x96xf32> -> vector<2x96xf32>
    %98 = vector.extract_strided_slice %97 {offsets = [0, 0], sizes = [2, 32], strides = [1, 1]} : vector<2x96xf32> to vector<2x32xf32>
    %99 = arith.addf %98, %13 : vector<2x32xf32>
    %100 = arith.negf %99 : vector<2x32xf32>
    %101 = math.exp %100 : vector<2x32xf32>
    %cst_25 = arith.constant 1.000000e+00 : f32
    %102 = vector.broadcast %cst_25 : f32 to vector<2x32xf32>
    %103 = arith.addf %102, %101 : vector<2x32xf32>
    %104 = arith.divf %102, %103 : vector<2x32xf32>
    %105 = vector.extract_strided_slice %97 {offsets = [0, 32], sizes = [2, 32], strides = [1, 1]} : vector<2x96xf32> to vector<2x32xf32>
    %106 = arith.addf %105, %18 : vector<2x32xf32>
    %107 = arith.negf %106 : vector<2x32xf32>
    %108 = math.exp %107 : vector<2x32xf32>
    %cst_26 = arith.constant 1.000000e+00 : f32
    %109 = vector.broadcast %cst_26 : f32 to vector<2x32xf32>
    %110 = arith.addf %109, %108 : vector<2x32xf32>
    %111 = arith.divf %109, %110 : vector<2x32xf32>
    %112 = vector.extract_strided_slice %97 {offsets = [0, 64], sizes = [2, 32], strides = [1, 1]} : vector<2x96xf32> to vector<2x32xf32>
    %113 = arith.addf %112, %24 : vector<2x32xf32>
    %114 = arith.mulf %104, %113 : vector<2x32xf32>
    %115 = arith.addf %21, %114 : vector<2x32xf32>
    %116 = math.tanh %115 : vector<2x32xf32>
    %117 = arith.subf %95, %116 : vector<2x32xf32>
    %118 = arith.mulf %111, %117 : vector<2x32xf32>
    %119 = arith.addf %116, %118 : vector<2x32xf32>
    %c6 = arith.constant 6 : index
    %c0_27 = arith.constant 0 : index
    %120 = vector.load %arg9[%c6, %c0_27] : memref<16x32xf32, #tpu.memory_space<vmem>>, vector<2x32xf32>
    tpu.vector_store %arg9[%c6, %c0_27], %119 {strides = array<i32>} : memref<16x32xf32, #tpu.memory_space<vmem>>, vector<2x32xf32>,
    %cst_28 = arith.constant dense<0.000000e+00> : vector<2x96xf32>
    %121 = tpu.matmul %119, %6, %cst_28 {dimension_numbers = #tpu.dot_dimension_numbers<[1], [0], [0], [1], [0, 0, 1, 1], [], []>} : vector<2x32xf32>, vector<32x96xf32>, vector<2x96xf32> -> vector<2x96xf32>
    %122 = vector.extract_strided_slice %121 {offsets = [0, 0], sizes = [2, 32], strides = [1, 1]} : vector<2x96xf32> to vector<2x32xf32>
    %123 = arith.addf %122, %13 : vector<2x32xf32>
    %124 = arith.negf %123 : vector<2x32xf32>
    %125 = math.exp %124 : vector<2x32xf32>
    %cst_29 = arith.constant 1.000000e+00 : f32
    %126 = vector.broadcast %cst_29 : f32 to vector<2x32xf32>
    %127 = arith.addf %126, %125 : vector<2x32xf32>
    %128 = arith.divf %126, %127 : vector<2x32xf32>
    %129 = vector.extract_strided_slice %121 {offsets = [0, 32], sizes = [2, 32], strides = [1, 1]} : vector<2x96xf32> to vector<2x32xf32>
    %130 = arith.addf %129, %18 : vector<2x32xf32>
    %131 = arith.negf %130 : vector<2x32xf32>
    %132 = math.exp %131 : vector<2x32xf32>
    %cst_30 = arith.constant 1.000000e+00 : f32
    %133 = vector.broadcast %cst_30 : f32 to vector<2x32xf32>
    %134 = arith.addf %133, %132 : vector<2x32xf32>
    %135 = arith.divf %133, %134 : vector<2x32xf32>
    %136 = vector.extract_strided_slice %121 {offsets = [0, 64], sizes = [2, 32], strides = [1, 1]} : vector<2x96xf32> to vector<2x32xf32>
    %137 = arith.addf %136, %24 : vector<2x32xf32>
    %138 = arith.mulf %128, %137 : vector<2x32xf32>
    %139 = arith.addf %21, %138 : vector<2x32xf32>
    %140 = math.tanh %139 : vector<2x32xf32>
    %141 = arith.subf %119, %140 : vector<2x32xf32>
    %142 = arith.mulf %135, %141 : vector<2x32xf32>
    %143 = arith.addf %140, %142 : vector<2x32xf32>
    %c8 = arith.constant 8 : index
    %c0_31 = arith.constant 0 : index
    %144 = vector.load %arg9[%c8, %c0_31] : memref<16x32xf32, #tpu.memory_space<vmem>>, vector<2x32xf32>
    tpu.vector_store %arg9[%c8, %c0_31], %143 {strides = array<i32>} : memref<16x32xf32, #tpu.memory_space<vmem>>, vector<2x32xf32>,
    %cst_32 = arith.constant dense<0.000000e+00> : vector<2x96xf32>
    %145 = tpu.matmul %143, %6, %cst_32 {dimension_numbers = #tpu.dot_dimension_numbers<[1], [0], [0], [1], [0, 0, 1, 1], [], []>} : vector<2x32xf32>, vector<32x96xf32>, vector<2x96xf32> -> vector<2x96xf32>
    %146 = vector.extract_strided_slice %145 {offsets = [0, 0], sizes = [2, 32], strides = [1, 1]} : vector<2x96xf32> to vector<2x32xf32>
    %147 = arith.addf %146, %13 : vector<2x32xf32>
    %148 = arith.negf %147 : vector<2x32xf32>
    %149 = math.exp %148 : vector<2x32xf32>
    %cst_33 = arith.constant 1.000000e+00 : f32
    %150 = vector.broadcast %cst_33 : f32 to vector<2x32xf32>
    %151 = arith.addf %150, %149 : vector<2x32xf32>
    %152 = arith.divf %150, %151 : vector<2x32xf32>
    %153 = vector.extract_strided_slice %145 {offsets = [0, 32], sizes = [2, 32], strides = [1, 1]} : vector<2x96xf32> to vector<2x32xf32>
    %154 = arith.addf %153, %18 : vector<2x32xf32>
    %155 = arith.negf %154 : vector<2x32xf32>
    %156 = math.exp %155 : vector<2x32xf32>
    %cst_34 = arith.constant 1.000000e+00 : f32
    %157 = vector.broadcast %cst_34 : f32 to vector<2x32xf32>
    %158 = arith.addf %157, %156 : vector<2x32xf32>
    %159 = arith.divf %157, %158 : vector<2x32xf32>
    %160 = vector.extract_strided_slice %145 {offsets = [0, 64], sizes = [2, 32], strides = [1, 1]} : vector<2x96xf32> to vector<2x32xf32>
    %161 = arith.addf %160, %24 : vector<2x32xf32>
    %162 = arith.mulf %152, %161 : vector<2x32xf32>
    %163 = arith.addf %21, %162 : vector<2x32xf32>
    %164 = math.tanh %163 : vector<2x32xf32>
    %165 = arith.subf %143, %164 : vector<2x32xf32>
    %166 = arith.mulf %159, %165 : vector<2x32xf32>
    %167 = arith.addf %164, %166 : vector<2x32xf32>
    %c10 = arith.constant 10 : index
    %c0_35 = arith.constant 0 : index
    %168 = vector.load %arg9[%c10, %c0_35] : memref<16x32xf32, #tpu.memory_space<vmem>>, vector<2x32xf32>
    tpu.vector_store %arg9[%c10, %c0_35], %167 {strides = array<i32>} : memref<16x32xf32, #tpu.memory_space<vmem>>, vector<2x32xf32>,
    %cst_36 = arith.constant dense<0.000000e+00> : vector<2x96xf32>
    %169 = tpu.matmul %167, %6, %cst_36 {dimension_numbers = #tpu.dot_dimension_numbers<[1], [0], [0], [1], [0, 0, 1, 1], [], []>} : vector<2x32xf32>, vector<32x96xf32>, vector<2x96xf32> -> vector<2x96xf32>
    %170 = vector.extract_strided_slice %169 {offsets = [0, 0], sizes = [2, 32], strides = [1, 1]} : vector<2x96xf32> to vector<2x32xf32>
    %171 = arith.addf %170, %13 : vector<2x32xf32>
    %172 = arith.negf %171 : vector<2x32xf32>
    %173 = math.exp %172 : vector<2x32xf32>
    %cst_37 = arith.constant 1.000000e+00 : f32
    %174 = vector.broadcast %cst_37 : f32 to vector<2x32xf32>
    %175 = arith.addf %174, %173 : vector<2x32xf32>
    %176 = arith.divf %174, %175 : vector<2x32xf32>
    %177 = vector.extract_strided_slice %169 {offsets = [0, 32], sizes = [2, 32], strides = [1, 1]} : vector<2x96xf32> to vector<2x32xf32>
    %178 = arith.addf %177, %18 : vector<2x32xf32>
    %179 = arith.negf %178 : vector<2x32xf32>
    %180 = math.exp %179 : vector<2x32xf32>
    %cst_38 = arith.constant 1.000000e+00 : f32
    %181 = vector.broadcast %cst_38 : f32 to vector<2x32xf32>
    %182 = arith.addf %181, %180 : vector<2x32xf32>
    %183 = arith.divf %181, %182 : vector<2x32xf32>
    %184 = vector.extract_strided_slice %169 {offsets = [0, 64], sizes = [2, 32], strides = [1, 1]} : vector<2x96xf32> to vector<2x32xf32>
    %185 = arith.addf %184, %24 : vector<2x32xf32>
    %186 = arith.mulf %176, %185 : vector<2x32xf32>
    %187 = arith.addf %21, %186 : vector<2x32xf32>
    %188 = math.tanh %187 : vector<2x32xf32>
    %189 = arith.subf %167, %188 : vector<2x32xf32>
    %190 = arith.mulf %183, %189 : vector<2x32xf32>
    %191 = arith.addf %188, %190 : vector<2x32xf32>
    %c12 = arith.constant 12 : index
    %c0_39 = arith.constant 0 : index
    %192 = vector.load %arg9[%c12, %c0_39] : memref<16x32xf32, #tpu.memory_space<vmem>>, vector<2x32xf32>
    tpu.vector_store %arg9[%c12, %c0_39], %191 {strides = array<i32>} : memref<16x32xf32, #tpu.memory_space<vmem>>, vector<2x32xf32>,
    %cst_40 = arith.constant dense<0.000000e+00> : vector<2x96xf32>
    %193 = tpu.matmul %191, %6, %cst_40 {dimension_numbers = #tpu.dot_dimension_numbers<[1], [0], [0], [1], [0, 0, 1, 1], [], []>} : vector<2x32xf32>, vector<32x96xf32>, vector<2x96xf32> -> vector<2x96xf32>
    %194 = vector.extract_strided_slice %193 {offsets = [0, 0], sizes = [2, 32], strides = [1, 1]} : vector<2x96xf32> to vector<2x32xf32>
    %195 = arith.addf %194, %13 : vector<2x32xf32>
    %196 = arith.negf %195 : vector<2x32xf32>
    %197 = math.exp %196 : vector<2x32xf32>
    %cst_41 = arith.constant 1.000000e+00 : f32
    %198 = vector.broadcast %cst_41 : f32 to vector<2x32xf32>
    %199 = arith.addf %198, %197 : vector<2x32xf32>
    %200 = arith.divf %198, %199 : vector<2x32xf32>
    %201 = vector.extract_strided_slice %193 {offsets = [0, 32], sizes = [2, 32], strides = [1, 1]} : vector<2x96xf32> to vector<2x32xf32>
    %202 = arith.addf %201, %18 : vector<2x32xf32>
    %203 = arith.negf %202 : vector<2x32xf32>
    %204 = math.exp %203 : vector<2x32xf32>
    %cst_42 = arith.constant 1.000000e+00 : f32
    %205 = vector.broadcast %cst_42 : f32 to vector<2x32xf32>
    %206 = arith.addf %205, %204 : vector<2x32xf32>
    %207 = arith.divf %205, %206 : vector<2x32xf32>
    %208 = vector.extract_strided_slice %193 {offsets = [0, 64], sizes = [2, 32], strides = [1, 1]} : vector<2x96xf32> to vector<2x32xf32>
    %209 = arith.addf %208, %24 : vector<2x32xf32>
    %210 = arith.mulf %200, %209 : vector<2x32xf32>
    %211 = arith.addf %21, %210 : vector<2x32xf32>
    %212 = math.tanh %211 : vector<2x32xf32>
    %213 = arith.subf %191, %212 : vector<2x32xf32>
    %214 = arith.mulf %207, %213 : vector<2x32xf32>
    %215 = arith.addf %212, %214 : vector<2x32xf32>
    %c14 = arith.constant 14 : index
    %c0_43 = arith.constant 0 : index
    %216 = vector.load %arg9[%c14, %c0_43] : memref<16x32xf32, #tpu.memory_space<vmem>>, vector<2x32xf32>
    tpu.vector_store %arg9[%c14, %c0_43], %215 {strides = array<i32>} : memref<16x32xf32, #tpu.memory_space<vmem>>, vector<2x32xf32>,
    %c0_44 = arith.constant 0 : index
    %c0_45 = arith.constant 0 : index
    %217 = vector.load %arg9[%c0_44, %c0_45] : memref<16x32xf32, #tpu.memory_space<vmem>>, vector<16x32xf32>
    %c0_46 = arith.constant 0 : index
    %c0_47 = arith.constant 0 : index
    %218 = vector.load %arg6[%c0_46, %c0_47] : memref<32x4xf32, #tpu.memory_space<vmem>>, vector<32x4xf32>
    %cst_48 = arith.constant dense<0.000000e+00> : vector<16x4xf32>
    %219 = tpu.matmul %217, %218, %cst_48 {dimension_numbers = #tpu.dot_dimension_numbers<[1], [0], [0], [1], [0, 0, 1, 1], [], []>} : vector<16x32xf32>, vector<32x4xf32>, vector<16x4xf32> -> vector<16x4xf32>
    %c0_49 = arith.constant 0 : index
    %c0_50 = arith.constant 0 : index
    %220 = vector.load %arg7[%c0_49, %c0_50] : memref<1x4xf32, #tpu.memory_space<vmem>>, vector<1x4xf32>
    %221 = vector.broadcast %220 : vector<1x4xf32> to vector<16x4xf32>
    %222 = arith.addf %219, %221 : vector<16x4xf32>
    %c0_51 = arith.constant 0 : index
    %c0_52 = arith.constant 0 : index
    %223 = vector.load %arg8[%c0_51, %c0_52] : memref<16x4xf32, #tpu.memory_space<vmem>>, vector<16x4xf32>
    tpu.vector_store %arg8[%c0_51, %c0_52], %222 {strides = array<i32>} : memref<16x4xf32, #tpu.memory_space<vmem>>, vector<16x4xf32>,
    return
  }
}

</mosaic_0001>

<bundles_post_ra>
// kernel: tpu_custom_call.1
= control target key start
LH: loop header
LB: loop body
LE: loop exit
PB: predicated region body
PF: predicated region fallthrough
CT: control target
= control target key end

     0   :  { %13 = vsyncpa [#allocation4], 0  ;;  %s809_s30 = smov [#allocation3]   ;;  %s810_s10 = smov 128   ;;  %s1009_s0 = inlined_call_operand.vmem [shape: f32[2,16], index: 0, kind: input, shape index: {}]   ;;  %s1010_s1 = inlined_call_operand.hbm [shape: f32[16,32], index: 1, kind: input, shape index: {}]   ;;  %s1011_s2 = inlined_call_operand.vmem [shape: f32[1,32], index: 2, kind: input, shape index: {}]   ;;  %s1012_s3 = inlined_call_operand.vmem [shape: f32[32,96], index: 3, kind: input, shape index: {}]   ;;  %s1013_s4 = inlined_call_operand.vmem [shape: f32[1,96], index: 4, kind: input, shape index: {}]   ;;  %s1014_s5 = inlined_call_operand.vmem [shape: f32[1,96], index: 5, kind: input, shape index: {}]   ;;  %s1015_s6 = inlined_call_operand.vmem [shape: f32[32,4], index: 6, kind: input, shape index: {}]   ;;  %s1016_s7 = inlined_call_operand.vmem [shape: f32[1,4], index: 7, kind: input, shape index: {}]   ;;  %s1017_s8 = inlined_call_operand.vmem [shape: f32[16,4], index: 8, kind: output, shape index: {}]  }
   0x1   :  { %s20_s29 = sshll.u32 %s1010_s1, 4  ;;  %s22_s9 = sshll.u32 %s809_s30, 4  ;;  %s21_s29 = int_to_ptr.hbm [resolvable:$true] %s20_s29  ;;  %s23_s9 = int_to_ptr.vmem [resolvable:$true] %s22_s9 }
   0x2   :  { %s811_s11 = smov 8  }
   0x3   :  { %28 = dma.hbm_to_vmem [thread:$0]  %s21_s29, 256, %s23_s9, [#allocation4], %s810_s10, %s810_s10, %s811_s11  }
   0x4   :  { %807 = dma.done.wait [#allocation4], 256  }
   0x5   :  { %808 = vsyncadd [#allocation4], 4294967040  ;;  %v47_v0 = vld [vmem:[#allocation3 + $0x8] sm:$0xff]  ;;  %v46_v1 = vld [vmem:[#allocation3] sm:$0xff]  ;;  %vm52_vm0 = vcmask 130048   ;;  %vm92_vm1 = vcmask 261120  }
   0x6   :  { %v45_v2 = vld [vmem:[%s1009_s0] sm:$0x3]  ;;  %70 = vmatpush.msra.mxu0 %v47_v0  ;;  %v79_v3 = vld [vmem:[%s1012_s3 + $0x18] sm:$0xff]  ;;  %v78_v4 = vld [vmem:[%s1012_s3 + $0x10] sm:$0xff]  ;;  %s812_s23 = smov 64   ;;  %s813_s28 = smov 32  }
   0x7   :  { %108 = vmatpush.msra.mxu2 %v79_v3  ;;  %253 = vmatpush.msra.mxu3 %v79_v3  ;;  %v77_v5 = vld [vmem:[%s1012_s3 + $0x8] sm:$0xff]  ;;  %v76_v6 = vld [vmem:[%s1012_s3] sm:$0xff]  ;;  %vm167_vm6 = vcmask 254976  }
   0x8   :  { %71 = vmatpush.msra.mxu0 %v46_v1  ;;  %393 = vmatpush.msra.mxu1 %v79_v3  ;;  %v731_v7 = vld [vmem:[%s1011_s2] ss:$0 sm:$0xff] }
   0x9   :  { %706 = vmatmul.msk.f32.vlgmr.msra.gmra.mxu0 %vm52_vm0, %v45_v2  ;;  %109 = vmatpush.msra.mxu2 %v78_v4  ;;  %v885_v10 = vld [vmem:[%s1014_s5] ss:$0 sm:$0xff] }
   0xa   :  { %254 = vmatpush.msra.mxu3 %v78_v4  ;;  %323 = vmatpush.msrb.mxu0 %v79_v3  ;;  %v80_v13 = vld [vmem:[%s1013_s4] sm:$0x1] }
   0xb   :  { %394 = vmatpush.msra.mxu1 %v78_v4  ;;  %110 = vmatpush.msra.mxu2 %v77_v5  ;;  %v81_v14 = vld [vmem:[%s1014_s5] sm:$0x1] }
   0xc   :  { %324 = vmatpush.msrb.mxu0 %v78_v4  ;;  %255 = vmatpush.msra.mxu3 %v77_v5  ;;  %v82_v15 = vadd.f32 %v81_v14, %v80_v13  ;;  %v902_v33 = vld [vmem:[%s1013_s4] ss:$0 sm:$0xff]  ;;  %s814_s4 = smov 96  }
   0xd   :  { %395 = vmatpush.msra.mxu1 %v77_v5  ;;  %111 = vmatpush.msra.mxu2 %v76_v6 }
   0xe   :  { %325 = vmatpush.msrb.mxu0 %v77_v5  ;;  %256 = vmatpush.msra.mxu3 %v76_v6  ;;  %v895_v16 = vperm.slane %v82_v15, 0 }
   0xf   :  { %183 = vmatpush.msrb.mxu2 %v79_v3  ;;  %396 = vmatpush.msra.mxu1 %v76_v6 }
  0x10   :  { %326 = vmatpush.msrb.mxu0 %v76_v6  ;;  %533 = vmatpush.msrb.mxu3 %v79_v3 }
  0x11   :  { %184 = vmatpush.msrb.mxu2 %v78_v4 }
  0x12   :  { %603 = vmatpush.msra.mxu0 %v79_v3  ;;  %534 = vmatpush.msrb.mxu3 %v78_v4 }
  0x13   :  { %185 = vmatpush.msrb.mxu2 %v77_v5 }
  0x14   :  { %604 = vmatpush.msra.mxu0 %v78_v4  ;;  %535 = vmatpush.msrb.mxu3 %v77_v5 }
  0x15   :  { %186 = vmatpush.msrb.mxu2 %v76_v6 }
  0x16   :  { %605 = vmatpush.msra.mxu0 %v77_v5  ;;  %536 = vmatpush.msrb.mxu3 %v76_v6 }
  0x18   :  { %606 = vmatpush.msra.mxu0 %v76_v6 }
  0x86   :  { %v73_v8 = vpop.f32.mrf.mxu0 }
  0x87   :  { %v74_v9 = vadd.f32 %v731_v7, %v73_v8 }
  0x89   :  { %707 = vmatmul.msk.f32.vlgmr.msra.gmra.mxu2 %vm92_vm1, %v74_v9 }
  0x8a   :  { %463 = vmatpush.msra.mxu2 %v79_v3 }
  0x8c   :  { %464 = vmatpush.msra.mxu2 %v78_v4 }
  0x8e   :  { %465 = vmatpush.msra.mxu2 %v77_v5 }
  0x90   :  { %466 = vmatpush.msra.mxu2 %v76_v6 }
 0x10c   :  { %v113_v11 = vpop.f32.mrf.mxu2 }
 0x10d   :  { %v136_v12 = vadd.f32 %v885_v10, %v113_v11  ;;  %v116_v17 = vadd.f32 %v113_v11, %v895_v16 }
 0x10f   :  { %138 = vrot.lane.b32.xlu0 %v136_v12, %s812_s23  ;;  %v708_v18 = vmul.f32 -1.442695, %v116_v17 }
 0x111   :  { %735 = vpow2.f32 %v708_v18 }
 0x117   :  { %v736_v19 = vpop.eup %735 }
 0x118   :  { %v120_v20 = vadd.f32 1.0, %v736_v19 }
 0x11a   :  { %737 = vrcp.f32 %v120_v20  ;;  %v132_v26 = vand.u32 2147483648, %v120_v20  ;;  %vm126_vm3 = vweird.f32 %v120_v20  ;;  %v130_v27 = vand.u32 2147483647, %v120_v20 }
 0x11c   :  { %v133_v29 = vor.u32 1.1754944e-38, %v132_v26  ;;  %vm131_vm5 = vcmp.eq.f32.partialorder %v130_v27, 8.507059e+37 }
 0x120   :  { %v738_v21 = vpop.eup %737 }
 0x121   :  { %v122_v22 = vmul.f32 %v738_v21, %v120_v20  ;;  %vm127_vm2 = vweird.f32 %v738_v21 }
 0x122   :  { %vm128_vm4 = vmor %vm126_vm3, %vm127_vm2 }
 0x123   :  { %v123_v23 = vsub.f32 1.0, %v122_v22 }
 0x125   :  { %v124_v24 = vmul.f32 %v738_v21, %v123_v23 }
 0x127   :  { %v125_v25 = vadd.f32 %v738_v21, %v124_v24 }
 0x129   :  { %v129_v28 = vsel %vm128_vm4, %v738_v21, %v125_v25  ;;  %vm698_vm4 = vcmask 31744  }
 0x12a   :  { %v134_v31 = vsel %vm131_vm5, %v133_v29, %v129_v28 }
 0x181   :  { %v139_v30 = vpop.permute.xlu0 %138 }
 0x182   :  { %v141_v32 = vmul.f32 %v139_v30, %v134_v31 }
 0x184   :  { %143 = vrot.lane.b32.xlu0 %v141_v32, %s812_s23 }
 0x1f6   :  { %v144_v34 = vpop.permute.xlu0 %143 }
 0x1f7   :  { %v146_v35 = vadd.f32 %v902_v33, %v144_v34 }
 0x1f9   :  { %739 = vtanh.f32 %v146_v35 }
 0x1ff   :  { %v740_v36 = vpop.eup %739 }
 0x200   :  { %149 = vrot.lane.b32.xlu1 %v740_v36, %s812_s23 }
 0x272   :  { %v150_v37 = vpop.permute.xlu1 %149 }
 0x273   :  { %v152_v38 = vsub.f32 %v74_v9, %v150_v37 }
 0x275   :  { %154 = vrot.lane.b32.xlu1 %v152_v38, %s813_s28 }
 0x2e7   :  { %v155_v39 = vpop.permute.xlu1 %154 }
 0x2e8   :  { %v157_v40 = vmul.f32 %v155_v39, %v134_v31 }
 0x2ea   :  { %159 = vrot.lane.b32.xlu2 %v157_v40, %s813_s28 }
 0x344   :  { %v160_v41 = vpop.permute.xlu2 %159 }
 0x345   :  { %v162_v42 = vadd.f32 %v740_v36, %v160_v41 }
 0x347   :  { %164 = vrot.lane.b32.xlu2 %v162_v42, %s812_s23 }
 0x3a1   :  { %v165_v43 = vpop.permute.xlu2 %164 }
 0x3a2   :  { %168 = vst.msk [vmem:[#allocation2] sm:$0x3] %vm167_vm6, %v165_v43  ;;  %709 = vmatmul.msk.f32.vlgmr.msrb.gmra.mxu2 %vm92_vm1, %v165_v43 }
 0x425   :  { %v188_v44 = vpop.f32.mrf.mxu2 }
 0x426   :  { %v211_v45 = vadd.f32 %v885_v10, %v188_v44  ;;  %v191_v46 = vadd.f32 %v188_v44, %v895_v16 }
 0x428   :  { %213 = vrot.lane.b32.xlu0 %v211_v45, %s812_s23  ;;  %v710_v47 = vmul.f32 -1.442695, %v191_v46 }
 0x42a   :  { %741 = vpow2.f32 %v710_v47 }
 0x430   :  { %v742_v48 = vpop.eup %741 }
 0x431   :  { %v195_v49 = vadd.f32 1.0, %v742_v48 }
 0x433   :  { %743 = vrcp.f32 %v195_v49  ;;  %v207_v55 = vand.u32 2147483648, %v195_v49  ;;  %vm201_vm8 = vweird.f32 %v195_v49  ;;  %v205_v56 = vand.u32 2147483647, %v195_v49 }
 0x435   :  { %v208_v58 = vor.u32 1.1754944e-38, %v207_v55  ;;  %vm206_vm10 = vcmp.eq.f32.partialorder %v205_v56, 8.507059e+37 }
 0x439   :  { %v744_v50 = vpop.eup %743 }
 0x43a   :  { %v197_v51 = vmul.f32 %v744_v50, %v195_v49  ;;  %vm202_vm7 = vweird.f32 %v744_v50 }
 0x43b   :  { %vm203_vm9 = vmor %vm201_vm8, %vm202_vm7 }
 0x43c   :  { %v198_v52 = vsub.f32 1.0, %v197_v51 }
 0x43e   :  { %v199_v53 = vmul.f32 %v744_v50, %v198_v52 }
 0x440   :  { %v200_v54 = vadd.f32 %v744_v50, %v199_v53 }
 0x442   :  { %v204_v57 = vsel %vm203_vm9, %v744_v50, %v200_v54 }
 0x443   :  { %v209_v60 = vsel %vm206_vm10, %v208_v58, %v204_v57 }
 0x49a   :  { %v214_v59 = vpop.permute.xlu0 %213 }
 0x49b   :  { %v216_v61 = vmul.f32 %v214_v59, %v209_v60 }
 0x49d   :  { %218 = vrot.lane.b32.xlu1 %v216_v61, %s812_s23 }
 0x50f   :  { %v219_v62 = vpop.permute.xlu1 %218 }
 0x510   :  { %v221_v63 = vadd.f32 %v902_v33, %v219_v62 }
 0x512   :  { %745 = vtanh.f32 %v221_v63  ;;  %v664_v63 = vld [vmem:[%s1015_s6 + $0x18] sm:$0xff] }
 0x513   :  { %687 = vmatpush.msrb.mxu1 %v664_v63 }
 0x518   :  { %v746_v0 = vpop.eup %745 }
 0x519   :  { %v223_v1 = vsub.f32 %v162_v42, %v746_v0 }
 0x51b   :  { %225 = vrot.lane.b32.xlu2 %v223_v1, %s814_s4  ;;  %v662_v1 = vld [vmem:[%s1015_s6 + $0x8] sm:$0xff] }
 0x575   :  { %v226_v2 = vpop.permute.xlu2 %225 }
 0x576   :  { %v228_v3 = vmul.f32 %v226_v2, %v209_v60  ;;  %v661_v2 = vld [vmem:[%s1015_s6] sm:$0xff] }
 0x578   :  { %230 = vrot.lane.b32.xlu0 %v228_v3, %s813_s28 }
 0x5ea   :  { %v231_v4 = vpop.permute.xlu0 %230 }
 0x5eb   :  { %v233_v5 = vadd.f32 %v746_v0, %v231_v4  ;;  %v663_v0 = vld [vmem:[%s1015_s6 + $0x10] sm:$0xff] }
 0x5ec   :  { %688 = vmatpush.msrb.mxu1 %v663_v0 }
 0x5ed   :  { %235 = vrot.lane.b32.xlu1 %v233_v5, %s812_s23 }
 0x5ee   :  { %689 = vmatpush.msrb.mxu1 %v662_v1 }
 0x5f0   :  { %690 = vmatpush.msrb.mxu1 %v661_v2 }
 0x65f   :  { %v236_v6 = vpop.permute.xlu1 %235 }
 0x660   :  { %238 = vst.msk [vmem:[#allocation2 + $0x2] sm:$0x3] %vm167_vm6, %v236_v6  ;;  %711 = vmatmul.msk.f32.vlgmr.msra.gmra.mxu3 %vm92_vm1, %v236_v6 }
 0x6e3   :  { %v258_v7 = vpop.f32.mrf.mxu3 }
 0x6e4   :  { %v281_v8 = vadd.f32 %v885_v10, %v258_v7  ;;  %v261_v9 = vadd.f32 %v258_v7, %v895_v16  ;;  %v959_v7 = vld [vmem:[%s1016_s7] ss:$0 sm:$0xff] }
 0x6e6   :  { %283 = vrot.lane.b32.xlu2 %v281_v8, %s812_s23  ;;  %v712_v11 = vmul.f32 -1.442695, %v261_v9 }
 0x6e8   :  { %747 = vpow2.f32 %v712_v11 }
 0x6ee   :  { %v748_v12 = vpop.eup %747 }
 0x6ef   :  { %v265_v13 = vadd.f32 1.0, %v748_v12 }
 0x6f1   :  { %749 = vrcp.f32 %v265_v13  ;;  %v277_v20 = vand.u32 2147483648, %v265_v13  ;;  %vm271_vm12 = vweird.f32 %v265_v13  ;;  %v275_v21 = vand.u32 2147483647, %v265_v13 }
 0x6f3   :  { %v278_v23 = vor.u32 1.1754944e-38, %v277_v20  ;;  %vm276_vm14 = vcmp.eq.f32.partialorder %v275_v21, 8.507059e+37 }
 0x6f7   :  { %v750_v14 = vpop.eup %749 }
 0x6f8   :  { %v267_v15 = vmul.f32 %v750_v14, %v265_v13  ;;  %vm272_vm11 = vweird.f32 %v750_v14 }
 0x6f9   :  { %vm273_vm13 = vmor %vm271_vm12, %vm272_vm11 }
 0x6fa   :  { %v268_v17 = vsub.f32 1.0, %v267_v15 }
 0x6fc   :  { %v269_v18 = vmul.f32 %v750_v14, %v268_v17 }
 0x6fe   :  { %v270_v19 = vadd.f32 %v750_v14, %v269_v18 }
 0x700   :  { %v274_v22 = vsel %vm273_vm13, %v750_v14, %v270_v19 }
 0x701   :  { %v279_v25 = vsel %vm276_vm14, %v278_v23, %v274_v22 }
 0x740   :  { %v284_v24 = vpop.permute.xlu2 %283 }
 0x741   :  { %v286_v26 = vmul.f32 %v284_v24, %v279_v25 }
 0x743   :  { %288 = vrot.lane.b32.xlu0 %v286_v26, %s812_s23 }
 0x7b5   :  { %v289_v27 = vpop.permute.xlu0 %288 }
 0x7b6   :  { %v291_v28 = vadd.f32 %v902_v33, %v289_v27 }
 0x7b8   :  { %751 = vtanh.f32 %v291_v28 }
 0x7be   :  { %v752_v29 = vpop.eup %751 }
 0x7bf   :  { %v293_v30 = vsub.f32 %v233_v5, %v752_v29 }
 0x7c1   :  { %295 = vrot.lane.b32.xlu1 %v293_v30, %s814_s4 }
 0x833   :  { %v296_v31 = vpop.permute.xlu1 %295 }
 0x834   :  { %v298_v32 = vmul.f32 %v296_v31, %v279_v25 }
 0x836   :  { %300 = vrot.lane.b32.xlu2 %v298_v32, %s813_s28 }
 0x890   :  { %v301_v34 = vpop.permute.xlu2 %300 }
 0x891   :  { %v303_v35 = vadd.f32 %v752_v29, %v301_v34 }
 0x893   :  { %305 = vrot.lane.b32.xlu0 %v303_v35, %s812_s23 }
 0x905   :  { %v306_v36 = vpop.permute.xlu0 %305 }
 0x906   :  { %308 = vst.msk [vmem:[#allocation2 + $0x4] sm:$0x3] %vm167_vm6, %v306_v36  ;;  %713 = vmatmul.msk.f32.vlgmr.msrb.gmra.mxu0 %vm92_vm1, %v306_v36 }
 0x983   :  { %v328_v37 = vpop.f32.mrf.mxu0 }
 0x984   :  { %v351_v38 = vadd.f32 %v885_v10, %v328_v37  ;;  %v331_v39 = vadd.f32 %v328_v37, %v895_v16 }
 0x986   :  { %353 = vrot.lane.b32.xlu1 %v351_v38, %s812_s23  ;;  %v714_v40 = vmul.f32 -1.442695, %v331_v39 }
 0x988   :  { %753 = vpow2.f32 %v714_v40 }
 0x98e   :  { %v754_v41 = vpop.eup %753 }
 0x98f   :  { %v335_v42 = vadd.f32 1.0, %v754_v41 }
 0x991   :  { %755 = vrcp.f32 %v335_v42  ;;  %v347_v48 = vand.u32 2147483648, %v335_v42  ;;  %vm341_vm0 = vweird.f32 %v335_v42  ;;  %v345_v49 = vand.u32 2147483647, %v335_v42 }
 0x993   :  { %v348_v51 = vor.u32 1.1754944e-38, %v347_v48  ;;  %vm346_vm3 = vcmp.eq.f32.partialorder %v345_v49, 8.507059e+37 }
 0x997   :  { %v756_v43 = vpop.eup %755 }
 0x998   :  { %v337_v44 = vmul.f32 %v756_v43, %v335_v42  ;;  %vm342_vm15 = vweird.f32 %v756_v43 }
 0x999   :  { %vm343_vm2 = vmor %vm341_vm0, %vm342_vm15 }
 0x99a   :  { %v338_v45 = vsub.f32 1.0, %v337_v44 }
 0x99c   :  { %v339_v46 = vmul.f32 %v756_v43, %v338_v45 }
 0x99e   :  { %v340_v47 = vadd.f32 %v756_v43, %v339_v46 }
 0x9a0   :  { %v344_v50 = vsel %vm343_vm2, %v756_v43, %v340_v47 }
 0x9a1   :  { %v349_v53 = vsel %vm346_vm3, %v348_v51, %v344_v50 }
 0x9f8   :  { %v354_v52 = vpop.permute.xlu1 %353 }
 0x9f9   :  { %v356_v54 = vmul.f32 %v354_v52, %v349_v53 }
 0x9fb   :  { %358 = vrot.lane.b32.xlu2 %v356_v54, %s812_s23 }
 0xa55   :  { %v359_v55 = vpop.permute.xlu2 %358 }
 0xa56   :  { %v361_v56 = vadd.f32 %v902_v33, %v359_v55 }
 0xa58   :  { %757 = vtanh.f32 %v361_v56 }
 0xa5e   :  { %v758_v57 = vpop.eup %757 }
 0xa5f   :  { %v363_v58 = vsub.f32 %v303_v35, %v758_v57 }
 0xa61   :  { %365 = vrot.lane.b32.xlu0 %v363_v58, %s814_s4 }
 0xad3   :  { %v366_v59 = vpop.permute.xlu0 %365 }
 0xad4   :  { %v368_v60 = vmul.f32 %v366_v59, %v349_v53 }
 0xad6   :  { %370 = vrot.lane.b32.xlu1 %v368_v60, %s813_s28 }
 0xb48   :  { %v371_v61 = vpop.permute.xlu1 %370 }
 0xb49   :  { %v373_v62 = vadd.f32 %v758_v57, %v371_v61 }
 0xb4b   :  { %375 = vrot.lane.b32.xlu2 %v373_v62, %s812_s23 }
 0xba5   :  { %v376_v3 = vpop.permute.xlu2 %375 }
 0xba6   :  { %378 = vst.msk [vmem:[#allocation2 + $0x6] sm:$0x3] %vm167_vm6, %v376_v3  ;;  %715 = vmatmul.msk.f32.vlgmr.msra.gmra.mxu1 %vm92_vm1, %v376_v3 }
 0xbad   :  { %v659_v4 = vld [vmem:[#allocation2] sm:$0xff] }
 0xbae   :  { %723 = vmatmul.msk.f32.vlgmr.msrb.gmra.mxu1 %vm92_vm1, %v659_v4 }
 0xc23   :  { %v398_v5 = vpop.f32.mrf.mxu1 }
 0xc24   :  { %v421_v6 = vadd.f32 %v885_v10, %v398_v5  ;;  %v401_v11 = vadd.f32 %v398_v5, %v895_v16 }
 0xc26   :  { %423 = vrot.lane.b32.xlu0 %v421_v6, %s812_s23  ;;  %v716_v12 = vmul.f32 -1.442695, %v401_v11 }
 0xc28   :  { %759 = vpow2.f32 %v716_v12 }
 0xc2b   :  { %v692_v8 = vpop.f32.mrf.mxu1 }
 0xc2c   :  { %v693_v9 = vadd.f32 %v959_v7, %v692_v8 }
 0xc2e   :  { %699 = vst.msk [vmem:[%s1017_s8] sm:$0xff] %vm698_vm4, %v693_v9  ;;  %v760_v13 = vpop.eup %759 }
 0xc2f   :  { %v405_v14 = vadd.f32 1.0, %v760_v13 }
 0xc31   :  { %761 = vrcp.f32 %v405_v14  ;;  %v417_v21 = vand.u32 2147483648, %v405_v14  ;;  %vm411_vm7 = vweird.f32 %v405_v14  ;;  %v415_v22 = vand.u32 2147483647, %v405_v14 }
 0xc33   :  { %v418_v24 = vor.u32 1.1754944e-38, %v417_v21  ;;  %vm416_vm9 = vcmp.eq.f32.partialorder %v415_v22, 8.507059e+37 }
 0xc37   :  { %v762_v15 = vpop.eup %761 }
 0xc38   :  { %v407_v17 = vmul.f32 %v762_v15, %v405_v14  ;;  %vm412_vm5 = vweird.f32 %v762_v15 }
 0xc39   :  { %vm413_vm8 = vmor %vm411_vm7, %vm412_vm5 }
 0xc3a   :  { %v408_v18 = vsub.f32 1.0, %v407_v17 }
 0xc3c   :  { %v409_v19 = vmul.f32 %v762_v15, %v408_v18 }
 0xc3e   :  { %v410_v20 = vadd.f32 %v762_v15, %v409_v19 }
 0xc40   :  { %v414_v23 = vsel %vm413_vm8, %v762_v15, %v410_v20 }
 0xc41   :  { %v419_v26 = vsel %vm416_vm9, %v418_v24, %v414_v23 }
 0xc98   :  { %v424_v25 = vpop.permute.xlu0 %423 }
 0xc99   :  { %v426_v27 = vmul.f32 %v424_v25, %v419_v26 }
 0xc9b   :  { %428 = vrot.lane.b32.xlu1 %v426_v27, %s812_s23 }
 0xd0d   :  { %v429_v28 = vpop.permute.xlu1 %428 }
 0xd0e   :  { %v431_v29 = vadd.f32 %v902_v33, %v429_v28 }
 0xd10   :  { %763 = vtanh.f32 %v431_v29 }
 0xd16   :  { %v764_v30 = vpop.eup %763 }
 0xd17   :  { %v433_v31 = vsub.f32 %v373_v62, %v764_v30 }
 0xd19   :  { %435 = vrot.lane.b32.xlu2 %v433_v31, %s814_s4 }
 0xd73   :  { %v436_v32 = vpop.permute.xlu2 %435 }
 0xd74   :  { %v438_v34 = vmul.f32 %v436_v32, %v419_v26 }
 0xd76   :  { %440 = vrot.lane.b32.xlu0 %v438_v34, %s813_s28 }
 0xde8   :  { %v441_v35 = vpop.permute.xlu0 %440 }
 0xde9   :  { %v443_v36 = vadd.f32 %v764_v30, %v441_v35 }
 0xdeb   :  { %445 = vrot.lane.b32.xlu1 %v443_v36, %s812_s23 }
 0xe5d   :  { %v446_v37 = vpop.permute.xlu1 %445 }
 0xe5e   :  { %448 = vst.msk [vmem:[#allocation2 + $0x8] sm:$0x3] %vm167_vm6, %v446_v37  ;;  %717 = vmatmul.msk.f32.vlgmr.msra.gmra.mxu2 %vm92_vm1, %v446_v37 }
 0xee1   :  { %v468_v38 = vpop.f32.mrf.mxu2 }
 0xee2   :  { %v491_v39 = vadd.f32 %v885_v10, %v468_v38  ;;  %v471_v40 = vadd.f32 %v468_v38, %v895_v16 }
 0xee4   :  { %493 = vrot.lane.b32.xlu2 %v491_v39, %s812_s23  ;;  %v718_v41 = vmul.f32 -1.442695, %v471_v40 }
 0xee6   :  { %765 = vpow2.f32 %v718_v41 }
 0xeec   :  { %v766_v42 = vpop.eup %765 }
 0xeed   :  { %v475_v43 = vadd.f32 1.0, %v766_v42 }
 0xeef   :  { %767 = vrcp.f32 %v475_v43  ;;  %v487_v49 = vand.u32 2147483648, %v475_v43  ;;  %vm481_vm11 = vweird.f32 %v475_v43  ;;  %v485_v50 = vand.u32 2147483647, %v475_v43 }
 0xef1   :  { %v488_v52 = vor.u32 1.1754944e-38, %v487_v49  ;;  %vm486_vm13 = vcmp.eq.f32.partialorder %v485_v50, 8.507059e+37 }
 0xef5   :  { %v768_v44 = vpop.eup %767 }
 0xef6   :  { %v477_v45 = vmul.f32 %v768_v44, %v475_v43  ;;  %vm482_vm10 = vweird.f32 %v768_v44 }
 0xef7   :  { %vm483_vm12 = vmor %vm481_vm11, %vm482_vm10 }
 0xef8   :  { %v478_v46 = vsub.f32 1.0, %v477_v45 }
 0xefa   :  { %v479_v47 = vmul.f32 %v768_v44, %v478_v46 }
 0xefc   :  { %v480_v48 = vadd.f32 %v768_v44, %v479_v47 }
 0xefe   :  { %v484_v51 = vsel %vm483_vm12, %v768_v44, %v480_v48 }
 0xeff   :  { %v489_v54 = vsel %vm486_vm13, %v488_v52, %v484_v51 }
 0xf3e   :  { %v494_v53 = vpop.permute.xlu2 %493 }
 0xf3f   :  { %v496_v55 = vmul.f32 %v494_v53, %v489_v54 }
 0xf41   :  { %498 = vrot.lane.b32.xlu0 %v496_v55, %s812_s23 }
 0xfb3   :  { %v499_v56 = vpop.permute.xlu0 %498 }
 0xfb4   :  { %v501_v57 = vadd.f32 %v902_v33, %v499_v56 }
 0xfb6   :  { %769 = vtanh.f32 %v501_v57 }
 0xfbc   :  { %v770_v58 = vpop.eup %769 }
 0xfbd   :  { %v503_v59 = vsub.f32 %v443_v36, %v770_v58 }
 0xfbf   :  { %505 = vrot.lane.b32.xlu1 %v503_v59, %s814_s4 }
0x1031   :  { %v506_v60 = vpop.permute.xlu1 %505 }
0x1032   :  { %v508_v61 = vmul.f32 %v506_v60, %v489_v54 }
0x1034   :  { %510 = vrot.lane.b32.xlu2 %v508_v61, %s813_s28 }
0x108e   :  { %v511_v62 = vpop.permute.xlu2 %510 }
0x108f   :  { %v513_v63 = vadd.f32 %v770_v58, %v511_v62 }
0x1091   :  { %515 = vrot.lane.b32.xlu0 %v513_v63, %s812_s23 }
0x1103   :  { %v516_v0 = vpop.permute.xlu0 %515 }
0x1104   :  { %518 = vst.msk [vmem:[#allocation2 + $0xa] sm:$0x3] %vm167_vm6, %v516_v0  ;;  %719 = vmatmul.msk.f32.vlgmr.msrb.gmra.mxu3 %vm92_vm1, %v516_v0 }
0x1187   :  { %v538_v1 = vpop.f32.mrf.mxu3 }
0x1188   :  { %v561_v2 = vadd.f32 %v885_v10, %v538_v1  ;;  %v541_v3 = vadd.f32 %v538_v1, %v895_v16 }
0x118a   :  { %563 = vrot.lane.b32.xlu1 %v561_v2, %s812_s23  ;;  %v720_v4 = vmul.f32 -1.442695, %v541_v3 }
0x118c   :  { %771 = vpow2.f32 %v720_v4 }
0x1192   :  { %v772_v5 = vpop.eup %771 }
0x1193   :  { %v545_v6 = vadd.f32 1.0, %v772_v5 }
0x1195   :  { %773 = vrcp.f32 %v545_v6  ;;  %v557_v14 = vand.u32 2147483648, %v545_v6  ;;  %vm551_vm15 = vweird.f32 %v545_v6  ;;  %v555_v15 = vand.u32 2147483647, %v545_v6 }
0x1197   :  { %v558_v18 = vor.u32 1.1754944e-38, %v557_v14  ;;  %vm556_vm2 = vcmp.eq.f32.partialorder %v555_v15, 8.507059e+37 }
0x119b   :  { %v774_v8 = vpop.eup %773 }
0x119c   :  { %v547_v9 = vmul.f32 %v774_v8, %v545_v6  ;;  %vm552_vm14 = vweird.f32 %v774_v8 }
0x119d   :  { %vm553_vm0 = vmor %vm551_vm15, %vm552_vm14 }
0x119e   :  { %v548_v11 = vsub.f32 1.0, %v547_v9 }
0x11a0   :  { %v549_v12 = vmul.f32 %v774_v8, %v548_v11 }
0x11a2   :  { %v550_v13 = vadd.f32 %v774_v8, %v549_v12 }
0x11a4   :  { %v554_v17 = vsel %vm553_vm0, %v774_v8, %v550_v13 }
0x11a5   :  { %v559_v20 = vsel %vm556_vm2, %v558_v18, %v554_v17 }
0x11fc   :  { %v564_v19 = vpop.permute.xlu1 %563 }
0x11fd   :  { %v566_v21 = vmul.f32 %v564_v19, %v559_v20 }
0x11ff   :  { %568 = vrot.lane.b32.xlu2 %v566_v21, %s812_s23 }
0x1259   :  { %v569_v22 = vpop.permute.xlu2 %568 }
0x125a   :  { %v571_v23 = vadd.f32 %v902_v33, %v569_v22 }
0x125c   :  { %775 = vtanh.f32 %v571_v23 }
0x1262   :  { %v776_v24 = vpop.eup %775 }
0x1263   :  { %v573_v25 = vsub.f32 %v513_v63, %v776_v24 }
0x1265   :  { %575 = vrot.lane.b32.xlu0 %v573_v25, %s814_s4 }
0x12d7   :  { %v576_v26 = vpop.permute.xlu0 %575 }
0x12d8   :  { %v578_v27 = vmul.f32 %v576_v26, %v559_v20 }
0x12da   :  { %580 = vrot.lane.b32.xlu1 %v578_v27, %s813_s28 }
0x134c   :  { %v581_v28 = vpop.permute.xlu1 %580 }
0x134d   :  { %v583_v29 = vadd.f32 %v776_v24, %v581_v28 }
0x134f   :  { %585 = vrot.lane.b32.xlu2 %v583_v29, %s812_s23 }
0x13a9   :  { %v586_v30 = vpop.permute.xlu2 %585 }
0x13aa   :  { %588 = vst.msk [vmem:[#allocation2 + $0xc] sm:$0x3] %vm167_vm6, %v586_v30  ;;  %721 = vmatmul.msk.f32.vlgmr.msra.gmra.mxu0 %vm92_vm1, %v586_v30 }
0x1427   :  { %v608_v31 = vpop.f32.mrf.mxu0 }
0x1428   :  { %v631_v32 = vadd.f32 %v885_v10, %v608_v31  ;;  %v611_v34 = vadd.f32 %v608_v31, %v895_v16 }
0x142a   :  { %633 = vrot.lane.b32.xlu0 %v631_v32, %s812_s23  ;;  %v722_v35 = vmul.f32 -1.442695, %v611_v34 }
0x142c   :  { %777 = vpow2.f32 %v722_v35 }
0x1432   :  { %v778_v36 = vpop.eup %777 }
0x1433   :  { %v615_v37 = vadd.f32 1.0, %v778_v36 }
0x1435   :  { %779 = vrcp.f32 %v615_v37  ;;  %v627_v43 = vand.u32 2147483648, %v615_v37  ;;  %vm621_vm5 = vweird.f32 %v615_v37  ;;  %v625_v44 = vand.u32 2147483647, %v615_v37 }
0x1437   :  { %v628_v45 = vor.u32 1.1754944e-38, %v627_v43  ;;  %vm626_vm8 = vcmp.eq.f32.partialorder %v625_v44, 8.507059e+37 }
0x143b   :  { %v780_v38 = vpop.eup %779 }
0x143c   :  { %v617_v39 = vmul.f32 %v780_v38, %v615_v37  ;;  %vm622_vm3 = vweird.f32 %v780_v38 }
0x143d   :  { %vm623_vm7 = vmor %vm621_vm5, %vm622_vm3 }
0x143e   :  { %v618_v40 = vsub.f32 1.0, %v617_v39 }
0x1440   :  { %v619_v41 = vmul.f32 %v780_v38, %v618_v40 }
0x1442   :  { %v620_v42 = vadd.f32 %v780_v38, %v619_v41 }
0x1444   :  { %v624_v10 = vsel %vm623_vm7, %v780_v38, %v620_v42 }
0x1445   :  { %v629_v16 = vsel %vm626_vm8, %v628_v45, %v624_v10 }
0x149c   :  { %v634_v46 = vpop.permute.xlu0 %633 }
0x149d   :  { %v636_v47 = vmul.f32 %v634_v46, %v629_v16 }
0x149f   :  { %638 = vrot.lane.b32.xlu1 %v636_v47, %s812_s23 }
0x1511   :  { %v639_v48 = vpop.permute.xlu1 %638 }
0x1512   :  { %v641_v49 = vadd.f32 %v902_v33, %v639_v48 }
0x1514   :  { %781 = vtanh.f32 %v641_v49 }
0x151a   :  { %v782_v50 = vpop.eup %781 }
0x151b   :  { %v643_v51 = vsub.f32 %v583_v29, %v782_v50 }
0x151d   :  { %645 = vrot.lane.b32.xlu2 %v643_v51, %s814_s4 }
0x1577   :  { %v646_v52 = vpop.permute.xlu2 %645 }
0x1578   :  { %v648_v53 = vmul.f32 %v646_v52, %v629_v16 }
0x157a   :  { %650 = vrot.lane.b32.xlu0 %v648_v53, %s813_s28 }
0x15ec   :  { %v651_v54 = vpop.permute.xlu0 %650 }
0x15ed   :  { %v653_v55 = vadd.f32 %v782_v50, %v651_v54 }
0x15ef   :  { %655 = vrot.lane.b32.xlu1 %v653_v55, %s812_s23 }
0x1661   :  { %v656_v56 = vpop.permute.xlu1 %655 }
0x1662   :  { %658 = vst.msk [vmem:[#allocation2 + $0xe] sm:$0x3] %vm167_vm6, %v656_v56 }
0x1669   :  { %v660_v57 = vld [vmem:[#allocation2 + $0x8] sm:$0xff] }
0x166a   :  { %724 = vmatmul.msk.f32.gmra.mxu1 %vm92_vm1, %v660_v57 }
0x16e7   :  { %v695_v33 = vpop.f32.mrf.mxu1 }
0x16e8   :  { %v696_v58 = vadd.f32 %v959_v7, %v695_v33 }
0x16ea   :  { %700 = vst.msk [vmem:[%s1017_s8 + $0x8] sm:$0xff] %vm698_vm4, %v696_v58 }
0x16eb   :  { %705 = vsyncpa [#allocation4], 1 }

</bundles_post_ra>
